<compile_context>
chip_gen: v5e
topology: v5e:2x2
jax: 0.10.0
libtpu: 0.0.40
codegen_flags: <defaults>
</compile_context>

<pallas_src>
import numpy as np

import jax
import jax.numpy as jnp
from jax.experimental import pallas as pl
from jax.experimental.pallas import tpu as pltpu


# Standard MC (Lorensen & Cline) corner ordering; bit c is set when the negated
# field is below the isolevel (i.e. original level > 0) at corner c.
_CORNERS = ((0, 0, 0), (1, 0, 0), (1, 1, 0), (0, 1, 0),
            (0, 0, 1), (1, 0, 1), (1, 1, 1), (0, 1, 1))

# Bit positions of the three per-axis edge-crossing flags in the packed word.
_EDGE_BIT = (8, 9, 10)


# ---------------------------------------------------------------------------
# pltpu.roll direction probe (run once on the actual backend).
# ---------------------------------------------------------------------------
_ROLL_IS_NUMPY_CONV = None


def _roll_is_numpy_convention():
    """True iff pltpu.roll(x, s)[i] == x[(i - s) % n]  (np.roll convention)."""
    global _ROLL_IS_NUMPY_CONV
    if _ROLL_IS_NUMPY_CONV is None:
        def probe(o_ref):
            o_ref[...] = pltpu.roll(
                jax.lax.broadcasted_iota(jnp.int32, (8, 128), 1), 1, axis=1)

        out = pl.pallas_call(
            probe,
            out_shape=jax.ShapeDtypeStruct((8, 128), jnp.int32),
            out_specs=pl.BlockSpec(memory_space=pltpu.MemorySpace.VMEM),
        )()
        _ROLL_IS_NUMPY_CONV = bool(int(out[0, 1]) == 0)
    return _ROLL_IS_NUMPY_CONV


# ---------------------------------------------------------------------------
# Kernel.
# ---------------------------------------------------------------------------
def _make_mc_kernel(R, TB, use_xlu_roll):
    N = R * R

    if use_xlu_roll:
        np_conv = _roll_is_numpy_convention()

        def lane_plus(x, k):                     # value at flattened lane p + k
            shift = (N - k) % N if np_conv else (k % N)
            return pltpu.roll(x, shift, axis=1)  # XLU lane rotation

        def sub_plus1(x):                        # value at local dim0 row r + 1
            shift = (TB - 1) if np_conv else 1
            return pltpu.roll(x, shift, axis=0)  # XLU sublane rotation
    else:
        # Fallback path (slice+concat relayouts) if the XLU roll fails to lower.
        def lane_plus(x, k):
            return jnp.roll(x, -k, axis=1)

        def sub_plus1(x):
            return jnp.roll(x, -1, axis=0)

    def kernel(level_ref, halo_ref, edge_ok_ref, packed_ref, t_ref):
        # forward(): level = -level before marching cubes.
        s = -level_ref[...]                                        # (TB, N) f32

        # Field at (x+1, y, z): roll rows up by one inside the tile, patch the
        # last row with the halo plane (first row of the next dim0 tile).  On
        # the global last plane the value is duplicated => no axis-0 crossing.
        row = jax.lax.broadcasted_iota(jnp.int32, (TB, N), 0)
        is_last_tile = pl.program_id(0) == pl.num_programs(0) - 1
        halo_s = -jnp.where(is_last_tile,
                            level_ref[TB - 1:TB, :], halo_ref[0:1, :])  # (1, N)
        s_x = jnp.where(row == TB - 1, halo_s, sub_plus1(s))

        # Remaining cube corners via lane rolls of the flattened (y*R + z)
        # axis; wrap-around lanes are either masked (edge_ok) or sliced away
        # by the caller (cube code at y,z = R-1).
        s_y, s_z, s_yz = lane_plus(s, R), lane_plus(s, 1), lane_plus(s, R + 1)
        s_xy, s_xz, s_xyz = (lane_plus(s_x, R), lane_plus(s_x, 1),
                             lane_plus(s_x, R + 1))

        def occ(v):            # inside <=> -level < 0 <=> original level > 0
            return (v < 0.0).astype(jnp.int32)

        # 8-bit MC configuration code, bit c <-> corner _CORNERS[c].
        code = (occ(s) + occ(s_x) * 2 + occ(s_xy) * 4 + occ(s_y) * 8
                + occ(s_z) * 16 + occ(s_xz) * 32 + occ(s_xyz) * 64
                + occ(s_yz) * 128)

        y_ok = edge_ok_ref[0:1, :] != 0                            # y < R - 1
        z_ok = edge_ok_ref[1:2, :] != 0                            # z < R - 1
        sgn = s < 0.0

        def edge(s_nbr, ok):
            cross = jnp.logical_xor(sgn, s_nbr < 0.0)
            if ok is not None:
                cross = jnp.logical_and(cross, ok)
            denom = jnp.where(cross, s - s_nbr, 1.0)
            # EUP approximate reciprocal: frees VALU issue slots; precision is
            # ample for a vertex-position lerp.
            t = jnp.where(cross, s * pl.reciprocal(denom, approx=True), 0.0)
            return cross, t

        c0, t0 = edge(s_x, None)      # axis-0 edges (halo handles x = R-1)
        c1, t1 = edge(s_y, y_ok)      # axis-1 edges
        c2, t2 = edge(s_z, z_ok)      # axis-2 edges

        packed_ref[...] = (code
                           + c0.astype(jnp.int32) * (1 << _EDGE_BIT[0])
                           + c1.astype(jnp.int32) * (1 << _EDGE_BIT[1])
                           + c2.astype(jnp.int32) * (1 << _EDGE_BIT[2]))
        t_ref[0, :, :] = t0
        t_ref[1, :, :] = t1
        t_ref[2, :, :] = t2

    return kernel


def _auto_tile_dim0(R):
    """Largest legal dim0 tile whose working set fits a conservative VMEM
    budget (sized for v7x's 64 MiB; v5e/v6e have 128 MiB)."""
    n_lane = R * R
    per_row = 128 * n_lane                 # dbl-buffered IO + f32 temporaries
    max_rows = max(1, (24 << 20) // per_row)
    cands = [d for d in range(8, R, 8) if R % d == 0] + [R]
    fitting = [d for d in cands if d <= max_rows]
    return max(fitting) if fitting else min(cands)


class MarchingCubeHelper:
    """Pallas-TPU port of tsr/models/isosurface.py::MarchingCubeHelper.
    The torch module has no learnable parameters."""

    points_range = (0.0, 1.0)

    def __init__(self, resolution, tile_dim0=None):
        self.resolution = int(resolution)
        if self.resolution < 8:
            raise ValueError("resolution must be >= 8")
        self.tile_dim0 = int(tile_dim0) if tile_dim0 else _auto_tile_dim0(self.resolution)
        R, TB = self.resolution, self.tile_dim0
        if R % TB != 0 or not (TB == R or TB % 8 == 0):
            raise ValueError("tile_dim0 must divide resolution and be a "
                             "multiple of 8 (or equal to resolution)")
        self._grid_vertices = None
        self._run = None

    # ---- grid_vertices: one-time cached constant; plain jnp per perf review.
    @property
    def grid_vertices(self):
        if self._grid_vertices is None:
            r = jnp.linspace(0.0, 1.0, self.resolution, dtype=jnp.float32)
            x, y, z = jnp.meshgrid(r, r, r, indexing="ij")
            self._grid_vertices = jnp.stack([x, y, z], axis=-1).reshape(-1, 3)
        return self._grid_vertices

    # ---- kernel wrapper ---------------------------------------------------
    def _build(self, use_xlu_roll):
        R, TB = self.resolution, self.tile_dim0
        N, C = R * R, R - 1
        n_tiles = R // TB
        n_row_blocks = max(1, R // 8)

        kernel = _make_mc_kernel(R, TB, use_xlu_roll)

        # Validity of the +1 lane-roll neighbours (last y/z row of the
        # flattened plane has no +1 edge).
        lane = np.arange(N)
        edge_ok = jnp.asarray(
            np.stack([(lane // R) < C, (lane % R) < C]).astype(np.int32))

        per_row = 128 * N
        vmem_limit = int(min(48 << 20, max(8 << 20, 2 * per_row * TB)))

        def halo_index(i):   # first 8-row block of the next dim0 tile (clamped)
            return (jnp.minimum((i + 1) * (TB // 8), n_row_blocks - 1), 0)

        call = pl.pallas_call(
            kernel,
            out_shape=(
                jax.ShapeDtypeStruct((R, N), jnp.int32),        # packed code+mask
                jax.ShapeDtypeStruct((3, R, N), jnp.float32),   # per-axis edge t
            ),
            grid=(n_tiles,),
            in_specs=[
                pl.BlockSpec((TB, N), lambda i: (i, 0)),        # dim0 tile
                pl.BlockSpec((8, N), halo_index),               # halo view (same array)
                pl.BlockSpec((2, N), lambda i: (0, 0)),         # edge validity
            ],
            out_specs=(
                pl.BlockSpec((TB, N), lambda i: (i, 0)),
                pl.BlockSpec((3, TB, N), lambda i: (0, i, 0)),
            ),
            compiler_params=pltpu.CompilerParams(
                dimension_semantics=("parallel",),   # 2 TCs on v7x
                vmem_limit_bytes=vmem_limit,
            ),
        )

        def run(level):
            level2d = jnp.reshape(level, (R, N)).astype(jnp.float32)
            packed, edge_t = call(level2d, level2d, edge_ok)
            cube_code = (packed & 0xFF).astype(jnp.uint8).reshape(R, R, R)[:C, :C, :C]
            edge_mask = jnp.stack(
                [(packed >> b) & 1 for b in _EDGE_BIT], axis=0
            ).astype(jnp.int32).reshape(3, R, R, R)
            return edge_t.reshape(3, R, R, R), cube_code, edge_mask

        return jax.jit(run)

    def __call__(self, level):
        """Returns (edge_t, cube_code, edge_mask):
             edge_t    : (3, R, R, R) f32   zero-crossing lerp parameter per +axis edge
             cube_code : (R-1,)*3     uint8 marching-cubes configuration per cube
             edge_mask : (3, R, R, R) int32 1 where the +axis edge crosses the isosurface
        Crossing-vertex positions in the torch module's output convention
        (v_pos[..., [2, 1, 0]] / (R - 1)) come from edge_vertex_positions()."""
        # TODO(synk): torchmcubes' triangle-table lookup + compaction into
        # variable-length (V,3) float / (F,3) int64 tensors is data-dependent in
        # output size and has no static-shape Pallas equivalent; the packed cube
        # codes and per-edge crossings above are the inputs that stage consumes.
        if self._run is None:
            err = None
            for use_xlu_roll in (True, False):
                try:
                    run = self._build(use_xlu_roll=use_xlu_roll)
                    out = run(level)
                    jax.block_until_ready(out)
                    self._run = run
                    return out
                except Exception as e:   # fall back to jnp.roll-based shifts
                    err = e
            raise err
        return self._run(level)

    def edge_vertex_positions(self, edge_t, edge_mask):
        """Dense candidate surface vertices (one slot per edge axis and grid
        vertex), already in the post-swap (dim0, dim1, dim2) / (R - 1)
        convention of the torch module; zero where the edge has no crossing."""
        R = self.resolution
        base = self.grid_vertices.reshape(1, R ** 3, 3)
        t = edge_t.reshape(3, R ** 3, 1).astype(jnp.float32)
        m = edge_mask.reshape(3, R ** 3, 1).astype(jnp.float32)
        step = jnp.eye(3, dtype=jnp.float32).reshape(3, 1, 3) / (R - 1.0)
        return (base + t * step) * m


# ---------------------------------------------------------------------------
# Pure-numpy reference for the dense marching-cubes quantities.
# ---------------------------------------------------------------------------
def _reference_mc(level3):
    s = -np.asarray(level3, np.float32)
    R = s.shape[0]
    C = R - 1

    occ = (s < 0.0).astype(np.int64)
    code = np.zeros((C, C, C), np.int64)
    for bit, (dx, dy, dz) in enumerate(_CORNERS):
        code += occ[dx:dx + C, dy:dy + C, dz:dz + C] << bit

    idx = np.minimum(np.arange(1, R + 1), R - 1)
    t = np.zeros((3, R, R, R), np.float32)
    m = np.zeros((3, R, R, R), np.int64)
    for a in range(3):
        s1 = np.take(s, idx, axis=a)          # +1 neighbour, last plane duplicated
        cross = (s < 0.0) != (s1 < 0.0)
        denom = np.where(cross, s - s1, 1.0)
        t[a] = np.where(cross, s / denom, 0.0)
        m[a] = cross
    return code, t, m


if __name__ == "__main__":
    R = 16
    key = jax.random.PRNGKey(0)

    # tile_dim0=8 -> a 2-step grid, exercising the pipelined / halo path.
    helper = MarchingCubeHelper(R, tile_dim0=8)
    gv = helper.grid_vertices                                     # (R^3, 3)

    # Synthetic level field: positive inside a sphere of radius 0.3 + noise.
    center = jnp.array([0.5, 0.5, 0.5], jnp.float32)
    level = 0.3 - jnp.linalg.norm(gv - center, axis=-1)
    level = level + 0.01 * jax.random.normal(key, level.shape, jnp.float32)

    edge_t, cube_code, edge_mask = helper(level)
    v_pos_dense = helper.edge_vertex_positions(edge_t, edge_mask)
    jax.block_until_ready((edge_t, cube_code, edge_mask, v_pos_dense))

    assert gv.shape == (R ** 3, 3)
    assert edge_t.shape == (3, R, R, R)
    assert cube_code.shape == (R - 1, R - 1, R - 1)
    assert edge_mask.shape == (3, R, R, R)
    assert v_pos_dense.shape == (3, R ** 3, 3)

    # Cross-check the kernel against the pure-numpy reference.
    code_ref, t_ref, m_ref = _reference_mc(np.asarray(level).reshape(R, R, R))
    np.testing.assert_array_equal(np.asarray(cube_code), code_ref)
    np.testing.assert_array_equal(np.asarray(edge_mask), m_ref)
    np.testing.assert_allclose(np.asarray(edge_t), t_ref, rtol=0, atol=2e-2)

    print("KERNEL_OK")
</pallas_src>

<mosaic_0001>
module attributes {stable_mosaic.version = 11 : i64} {
  func.func @kernel(%arg0: i32, %arg1: memref<8x256xf32, #tpu.memory_space<vmem>>, %arg2: memref<8x256xf32, #tpu.memory_space<vmem>>, %arg3: memref<2x256xi32, #tpu.memory_space<vmem>>, %arg4: memref<8x256xi32, #tpu.memory_space<vmem>>, %arg5: memref<3x8x256xf32, #tpu.memory_space<vmem>>) attributes {dimension_semantics = [#tpu.dimension_semantics<parallel>], iteration_bounds = array<i64: 2>, scalar_prefetch = 0 : i64, scratch_operands = 0 : i64, tpu.core_type = #tpu.core_type<tc>, window_params = [{transform_indices = @transform_0, window_bounds = array<i64: 8, 256>}, {transform_indices = @transform_1, window_bounds = array<i64: 8, 256>}, {pipeline_mode = #tpu.pipeline_mode<synchronous>, transform_indices = @transform_2, window_bounds = array<i64: 2, 256>}, {transform_indices = @transform_3, window_bounds = array<i64: 8, 256>}, {transform_indices = @transform_4, window_bounds = array<i64: 3, 8, 256>}]} {
    %c0 = arith.constant 0 : index
    %c0_0 = arith.constant 0 : index
    %0 = vector.load %arg1[%c0, %c0_0] : memref<8x256xf32, #tpu.memory_space<vmem>>, vector<8x256xf32>
    %cst = arith.constant 0.000000e+00 : f32
    %1 = vector.broadcast %cst : f32 to vector<8x256xf32>
    %2 = arith.subf %1, %0 : vector<8x256xf32>
    %3 = tpu.iota {dimensions = array<i32: 0>} : vector<8x256xi32>
    %c1_i32 = arith.constant 1 : i32
    %4 = arith.cmpi eq, %arg0, %c1_i32 : i32
    %c7 = arith.constant 7 : index
    %c0_1 = arith.constant 0 : index
    %5 = vector.load %arg1[%c7, %c0_1] : memref<8x256xf32, #tpu.memory_space<vmem>>, vector<1x256xf32>
    %c0_2 = arith.constant 0 : index
    %c0_3 = arith.constant 0 : index
    %6 = vector.load %arg2[%c0_2, %c0_3] : memref<8x256xf32, #tpu.memory_space<vmem>>, vector<1x256xf32>
    %7 = arith.select %4, %5, %6 : vector<1x256xf32>
    %cst_4 = arith.constant 0.000000e+00 : f32
    %8 = vector.broadcast %cst_4 : f32 to vector<1x256xf32>
    %9 = arith.subf %8, %7 : vector<1x256xf32>
    %c7_i32 = arith.constant 7 : i32
    %10 = vector.broadcast %c7_i32 : i32 to vector<8x256xi32>
    %11 = arith.cmpi eq, %3, %10 : vector<8x256xi32>
    %12 = vector.extract_strided_slice %2 {offsets = [1, 0], sizes = [7, 256], strides = [1, 1]} : vector<8x256xf32> to vector<7x256xf32>
    %13 = vector.extract_strided_slice %2 {offsets = [0, 0], sizes = [1, 256], strides = [1, 1]} : vector<8x256xf32> to vector<1x256xf32>
    %14 = tpu.concatenate %12, %13 in 0 : vector<7x256xf32>, vector<1x256xf32> -> vector<8x256xf32>
    %15 = vector.shape_cast %9 : vector<1x256xf32> to vector<1x256xf32>
    %16 = vector.broadcast %15 : vector<1x256xf32> to vector<8x256xf32>
    %17 = arith.select %11, %16, %14 : vector<8x256xi1>, vector<8x256xf32>
    %18 = vector.extract_strided_slice %2 {offsets = [0, 16], sizes = [8, 240], strides = [1, 1]} : vector<8x256xf32> to vector<8x240xf32>
    %19 = vector.extract_strided_slice %2 {offsets = [0, 0], sizes = [8, 16], strides = [1, 1]} : vector<8x256xf32> to vector<8x16xf32>
    %20 = tpu.concatenate %18, %19 in 1 : vector<8x240xf32>, vector<8x16xf32> -> vector<8x256xf32>
    %21 = vector.extract_strided_slice %2 {offsets = [0, 1], sizes = [8, 255], strides = [1, 1]} : vector<8x256xf32> to vector<8x255xf32>
    %22 = vector.extract_strided_slice %2 {offsets = [0, 0], sizes = [8, 1], strides = [1, 1]} : vector<8x256xf32> to vector<8x1xf32>
    %23 = tpu.concatenate %21, %22 in 1 : vector<8x255xf32>, vector<8x1xf32> -> vector<8x256xf32>
    %24 = vector.extract_strided_slice %2 {offsets = [0, 17], sizes = [8, 239], strides = [1, 1]} : vector<8x256xf32> to vector<8x239xf32>
    %25 = vector.extract_strided_slice %2 {offsets = [0, 0], sizes = [8, 17], strides = [1, 1]} : vector<8x256xf32> to vector<8x17xf32>
    %26 = tpu.concatenate %24, %25 in 1 : vector<8x239xf32>, vector<8x17xf32> -> vector<8x256xf32>
    %27 = vector.extract_strided_slice %17 {offsets = [0, 16], sizes = [8, 240], strides = [1, 1]} : vector<8x256xf32> to vector<8x240xf32>
    %28 = vector.extract_strided_slice %17 {offsets = [0, 0], sizes = [8, 16], strides = [1, 1]} : vector<8x256xf32> to vector<8x16xf32>
    %29 = tpu.concatenate %27, %28 in 1 : vector<8x240xf32>, vector<8x16xf32> -> vector<8x256xf32>
    %30 = vector.extract_strided_slice %17 {offsets = [0, 1], sizes = [8, 255], strides = [1, 1]} : vector<8x256xf32> to vector<8x255xf32>
    %31 = vector.extract_strided_slice %17 {offsets = [0, 0], sizes = [8, 1], strides = [1, 1]} : vector<8x256xf32> to vector<8x1xf32>
    %32 = tpu.concatenate %30, %31 in 1 : vector<8x255xf32>, vector<8x1xf32> -> vector<8x256xf32>
    %33 = vector.extract_strided_slice %17 {offsets = [0, 17], sizes = [8, 239], strides = [1, 1]} : vector<8x256xf32> to vector<8x239xf32>
    %34 = vector.extract_strided_slice %17 {offsets = [0, 0], sizes = [8, 17], strides = [1, 1]} : vector<8x256xf32> to vector<8x17xf32>
    %35 = tpu.concatenate %33, %34 in 1 : vector<8x239xf32>, vector<8x17xf32> -> vector<8x256xf32>
    %cst_5 = arith.constant 0.000000e+00 : f32
    %36 = vector.broadcast %cst_5 : f32 to vector<8x256xf32>
    %37 = arith.cmpf olt, %2, %36 : vector<8x256xf32>
    %38 = arith.extui %37 : vector<8x256xi1> to vector<8x256xi32>
    %cst_6 = arith.constant 0.000000e+00 : f32
    %39 = vector.broadcast %cst_6 : f32 to vector<8x256xf32>
    %40 = arith.cmpf olt, %17, %39 : vector<8x256xf32>
    %41 = arith.extui %40 : vector<8x256xi1> to vector<8x256xi32>
    %c2_i32 = arith.constant 2 : i32
    %42 = vector.broadcast %c2_i32 : i32 to vector<8x256xi32>
    %43 = arith.muli %41, %42 : vector<8x256xi32>
    %44 = arith.addi %38, %43 : vector<8x256xi32>
    %cst_7 = arith.constant 0.000000e+00 : f32
    %45 = vector.broadcast %cst_7 : f32 to vector<8x256xf32>
    %46 = arith.cmpf olt, %29, %45 : vector<8x256xf32>
    %47 = arith.extui %46 : vector<8x256xi1> to vector<8x256xi32>
    %c4_i32 = arith.constant 4 : i32
    %48 = vector.broadcast %c4_i32 : i32 to vector<8x256xi32>
    %49 = arith.muli %47, %48 : vector<8x256xi32>
    %50 = arith.addi %44, %49 : vector<8x256xi32>
    %cst_8 = arith.constant 0.000000e+00 : f32
    %51 = vector.broadcast %cst_8 : f32 to vector<8x256xf32>
    %52 = arith.cmpf olt, %20, %51 : vector<8x256xf32>
    %53 = arith.extui %52 : vector<8x256xi1> to vector<8x256xi32>
    %c8_i32 = arith.constant 8 : i32
    %54 = vector.broadcast %c8_i32 : i32 to vector<8x256xi32>
    %55 = arith.muli %53, %54 : vector<8x256xi32>
    %56 = arith.addi %50, %55 : vector<8x256xi32>
    %cst_9 = arith.constant 0.000000e+00 : f32
    %57 = vector.broadcast %cst_9 : f32 to vector<8x256xf32>
    %58 = arith.cmpf olt, %23, %57 : vector<8x256xf32>
    %59 = arith.extui %58 : vector<8x256xi1> to vector<8x256xi32>
    %c16_i32 = arith.constant 16 : i32
    %60 = vector.broadcast %c16_i32 : i32 to vector<8x256xi32>
    %61 = arith.muli %59, %60 : vector<8x256xi32>
    %62 = arith.addi %56, %61 : vector<8x256xi32>
    %cst_10 = arith.constant 0.000000e+00 : f32
    %63 = vector.broadcast %cst_10 : f32 to vector<8x256xf32>
    %64 = arith.cmpf olt, %32, %63 : vector<8x256xf32>
    %65 = arith.extui %64 : vector<8x256xi1> to vector<8x256xi32>
    %c32_i32 = arith.constant 32 : i32
    %66 = vector.broadcast %c32_i32 : i32 to vector<8x256xi32>
    %67 = arith.muli %65, %66 : vector<8x256xi32>
    %68 = arith.addi %62, %67 : vector<8x256xi32>
    %cst_11 = arith.constant 0.000000e+00 : f32
    %69 = vector.broadcast %cst_11 : f32 to vector<8x256xf32>
    %70 = arith.cmpf olt, %35, %69 : vector<8x256xf32>
    %71 = arith.extui %70 : vector<8x256xi1> to vector<8x256xi32>
    %c64_i32 = arith.constant 64 : i32
    %72 = vector.broadcast %c64_i32 : i32 to vector<8x256xi32>
    %73 = arith.muli %71, %72 : vector<8x256xi32>
    %74 = arith.addi %68, %73 : vector<8x256xi32>
    %cst_12 = arith.constant 0.000000e+00 : f32
    %75 = vector.broadcast %cst_12 : f32 to vector<8x256xf32>
    %76 = arith.cmpf olt, %26, %75 : vector<8x256xf32>
    %77 = arith.extui %76 : vector<8x256xi1> to vector<8x256xi32>
    %c128_i32 = arith.constant 128 : i32
    %78 = vector.broadcast %c128_i32 : i32 to vector<8x256xi32>
    %79 = arith.muli %77, %78 : vector<8x256xi32>
    %80 = arith.addi %74, %79 : vector<8x256xi32>
    %c0_13 = arith.constant 0 : index
    %c0_14 = arith.constant 0 : index
    %81 = vector.load %arg3[%c0_13, %c0_14] : memref<2x256xi32, #tpu.memory_space<vmem>>, vector<1x256xi32>
    %c0_i32 = arith.constant 0 : i32
    %82 = vector.broadcast %c0_i32 : i32 to vector<1x256xi32>
    %83 = arith.cmpi ne, %81, %82 : vector<1x256xi32>
    %c1 = arith.constant 1 : index
    %c0_15 = arith.constant 0 : index
    %84 = vector.load %arg3[%c1, %c0_15] : memref<2x256xi32, #tpu.memory_space<vmem>>, vector<1x256xi32>
    %c0_i32_16 = arith.constant 0 : i32
    %85 = vector.broadcast %c0_i32_16 : i32 to vector<1x256xi32>
    %86 = arith.cmpi ne, %84, %85 : vector<1x256xi32>
    %cst_17 = arith.constant 0.000000e+00 : f32
    %87 = vector.broadcast %cst_17 : f32 to vector<8x256xf32>
    %88 = arith.cmpf olt, %2, %87 : vector<8x256xf32>
    %cst_18 = arith.constant 0.000000e+00 : f32
    %89 = vector.broadcast %cst_18 : f32 to vector<8x256xf32>
    %90 = arith.cmpf olt, %17, %89 : vector<8x256xf32>
    %91 = arith.xori %88, %90 : vector<8x256xi1>
    %92 = arith.subf %2, %17 : vector<8x256xf32>
    %cst_19 = arith.constant 1.000000e+00 : f32
    %93 = vector.broadcast %cst_19 : f32 to vector<8x256xf32>
    %94 = arith.select %91, %92, %93 : vector<8x256xi1>, vector<8x256xf32>
    %95 = tpu.reciprocal %94 {approx = true} : vector<8x256xf32> -> vector<8x256xf32>
    %96 = arith.mulf %2, %95 : vector<8x256xf32>
    %cst_20 = arith.constant 0.000000e+00 : f32
    %97 = vector.broadcast %cst_20 : f32 to vector<8x256xf32>
    %98 = arith.select %91, %96, %97 : vector<8x256xi1>, vector<8x256xf32>
    %cst_21 = arith.constant 0.000000e+00 : f32
    %99 = vector.broadcast %cst_21 : f32 to vector<8x256xf32>
    %100 = arith.cmpf olt, %20, %99 : vector<8x256xf32>
    %101 = arith.xori %88, %100 : vector<8x256xi1>
    %102 = vector.broadcast %83 : vector<1x256xi1> to vector<8x256xi1>
    %103 = arith.andi %101, %102 : vector<8x256xi1>
    %104 = arith.subf %2, %20 : vector<8x256xf32>
    %cst_22 = arith.constant 1.000000e+00 : f32
    %105 = vector.broadcast %cst_22 : f32 to vector<8x256xf32>
    %106 = arith.select %103, %104, %105 : vector<8x256xi1>, vector<8x256xf32>
    %107 = tpu.reciprocal %106 {approx = true} : vector<8x256xf32> -> vector<8x256xf32>
    %108 = arith.mulf %2, %107 : vector<8x256xf32>
    %cst_23 = arith.constant 0.000000e+00 : f32
    %109 = vector.broadcast %cst_23 : f32 to vector<8x256xf32>
    %110 = arith.select %103, %108, %109 : vector<8x256xi1>, vector<8x256xf32>
    %cst_24 = arith.constant 0.000000e+00 : f32
    %111 = vector.broadcast %cst_24 : f32 to vector<8x256xf32>
    %112 = arith.cmpf olt, %23, %111 : vector<8x256xf32>
    %113 = arith.xori %88, %112 : vector<8x256xi1>
    %114 = vector.broadcast %86 : vector<1x256xi1> to vector<8x256xi1>
    %115 = arith.andi %113, %114 : vector<8x256xi1>
    %116 = arith.subf %2, %23 : vector<8x256xf32>
    %cst_25 = arith.constant 1.000000e+00 : f32
    %117 = vector.broadcast %cst_25 : f32 to vector<8x256xf32>
    %118 = arith.select %115, %116, %117 : vector<8x256xi1>, vector<8x256xf32>
    %119 = tpu.reciprocal %118 {approx = true} : vector<8x256xf32> -> vector<8x256xf32>
    %120 = arith.mulf %2, %119 : vector<8x256xf32>
    %cst_26 = arith.constant 0.000000e+00 : f32
    %121 = vector.broadcast %cst_26 : f32 to vector<8x256xf32>
    %122 = arith.select %115, %120, %121 : vector<8x256xi1>, vector<8x256xf32>
    %123 = arith.extui %91 : vector<8x256xi1> to vector<8x256xi32>
    %c256_i32 = arith.constant 256 : i32
    %124 = vector.broadcast %c256_i32 : i32 to vector<8x256xi32>
    %125 = arith.muli %123, %124 : vector<8x256xi32>
    %126 = arith.addi %80, %125 : vector<8x256xi32>
    %127 = arith.extui %103 : vector<8x256xi1> to vector<8x256xi32>
    %c512_i32 = arith.constant 512 : i32
    %128 = vector.broadcast %c512_i32 : i32 to vector<8x256xi32>
    %129 = arith.muli %127, %128 : vector<8x256xi32>
    %130 = arith.addi %126, %129 : vector<8x256xi32>
    %131 = arith.extui %115 : vector<8x256xi1> to vector<8x256xi32>
    %c1024_i32 = arith.constant 1024 : i32
    %132 = vector.broadcast %c1024_i32 : i32 to vector<8x256xi32>
    %133 = arith.muli %131, %132 : vector<8x256xi32>
    %134 = arith.addi %130, %133 : vector<8x256xi32>
    %c0_27 = arith.constant 0 : index
    %c0_28 = arith.constant 0 : index
    %135 = vector.load %arg4[%c0_27, %c0_28] : memref<8x256xi32, #tpu.memory_space<vmem>>, vector<8x256xi32>
    tpu.vector_store %arg4[%c0_27, %c0_28], %134 {strides = array<i32>} : memref<8x256xi32, #tpu.memory_space<vmem>>, vector<8x256xi32>,
    %c0_29 = arith.constant 0 : index
    %c0_30 = arith.constant 0 : index
    %c0_31 = arith.constant 0 : index
    %136 = vector.load %arg5[%c0_29, %c0_30, %c0_31] : memref<3x8x256xf32, #tpu.memory_space<vmem>>, vector<1x8x256xf32>
    %137 = vector.shape_cast %136 : vector<1x8x256xf32> to vector<8x256xf32>
    %138 = vector.shape_cast %98 : vector<8x256xf32> to vector<1x8x256xf32>
    tpu.vector_store %arg5[%c0_29, %c0_30, %c0_31], %138 {strides = array<i32>} : memref<3x8x256xf32, #tpu.memory_space<vmem>>, vector<1x8x256xf32>,
    %c1_32 = arith.constant 1 : index
    %c0_33 = arith.constant 0 : index
    %c0_34 = arith.constant 0 : index
    %139 = vector.load %arg5[%c1_32, %c0_33, %c0_34] : memref<3x8x256xf32, #tpu.memory_space<vmem>>, vector<1x8x256xf32>
    %140 = vector.shape_cast %139 : vector<1x8x256xf32> to vector<8x256xf32>
    %141 = vector.shape_cast %110 : vector<8x256xf32> to vector<1x8x256xf32>
    tpu.vector_store %arg5[%c1_32, %c0_33, %c0_34], %141 {strides = array<i32>} : memref<3x8x256xf32, #tpu.memory_space<vmem>>, vector<1x8x256xf32>,
    %c2 = arith.constant 2 : index
    %c0_35 = arith.constant 0 : index
    %c0_36 = arith.constant 0 : index
    %142 = vector.load %arg5[%c2, %c0_35, %c0_36] : memref<3x8x256xf32, #tpu.memory_space<vmem>>, vector<1x8x256xf32>
    %143 = vector.shape_cast %142 : vector<1x8x256xf32> to vector<8x256xf32>
    %144 = vector.shape_cast %122 : vector<8x256xf32> to vector<1x8x256xf32>
    tpu.vector_store %arg5[%c2, %c0_35, %c0_36], %144 {strides = array<i32>} : memref<3x8x256xf32, #tpu.memory_space<vmem>>, vector<1x8x256xf32>,
    return
  }
  func.func @transform_0(%arg0: i32) -> (i32, i32) {
    %c0_i32 = arith.constant 0 : i32
    %c0_i32_0 = arith.constant 0 : i32
    return %arg0, %c0_i32 : i32, i32
  }
  func.func @transform_1(%arg0: i32) -> (i32, i32) {
    %c1_i32 = arith.constant 1 : i32
    %0 = arith.addi %arg0, %c1_i32 : i32
    %c1_i32_0 = arith.constant 1 : i32
    %1 = arith.muli %0, %c1_i32_0 : i32
    %c1_i32_1 = arith.constant 1 : i32
    %2 = arith.minsi %1, %c1_i32_1 : i32
    %c0_i32 = arith.constant 0 : i32
    %c0_i32_2 = arith.constant 0 : i32
    return %2, %c0_i32 : i32, i32
  }
  func.func @transform_2(%arg0: i32) -> (i32, i32) {
    %c0_i32 = arith.constant 0 : i32
    %c0_i32_0 = arith.constant 0 : i32
    %c0_i32_1 = arith.constant 0 : i32
    return %c0_i32, %c0_i32_0 : i32, i32
  }
  func.func @transform_3(%arg0: i32) -> (i32, i32) {
    %c0_i32 = arith.constant 0 : i32
    %c0_i32_0 = arith.constant 0 : i32
    return %arg0, %c0_i32 : i32, i32
  }
  func.func @transform_4(%arg0: i32) -> (i32, i32, i32) {
    %c0_i32 = arith.constant 0 : i32
    %c0_i32_0 = arith.constant 0 : i32
    %c0_i32_1 = arith.constant 0 : i32
    return %c0_i32, %arg0, %c0_i32_0 : i32, i32, i32
  }
}

</mosaic_0001>

<bundles_post_ra>
// kernel: run.1
= control target key start
LH: loop header
LB: loop body
LE: loop exit
PB: predicated region body
PF: predicated region fallthrough
CT: control target
= control target key end

     0   :  { %s734_s15 = smov 0   ;;  %s736_s16 = smov 0   ;;  %s1011_s0 = inlined_call_operand.vmem [shape: f32[16,256], index: 0, kind: input, shape index: {}, may-alias: {0,1}]   ;;  %s1012_s1 = inlined_call_operand.vmem [shape: f32[16,256], index: 1, kind: input, shape index: {}, may-alias: {0,1}]   ;;  %s1013_s2 = inlined_call_operand.vmem [shape: s32[2,256], index: 2, kind: input, shape index: {}]   ;;  %s1014_s3 = inlined_call_operand.vmem [shape: s32[16,256], index: 3, kind: output, shape index: {0}]   ;;  %s1015_s4 = inlined_call_operand.vmem [shape: f32[3,16,256], index: 4, kind: output, shape index: {1}]  }
   0x1   :  { %s738_s17 = smov 0  }
   0x2 LB: > { %s747_s18 = sadd.s32 4294967295, %s703_s17   ;;  %s749_s19 = sadd.s32 1, %s703_s17   ;;  %s703_s17 = sphi %s738_s17, %s1042_s17   ;;  %s699_s16 = sphi %s736_s16, %s1041_s16   ;;  %s695_s15 = sphi %s734_s15, %s1040_s15  }
   0x3   : > { %s124_s20 = ssub.s32 %s703_s17, %s749_s19  ;;  %s127_s21 = sadd.s32 1, %s699_s16 }
   0x4   : > { %p125_p0 = scmp.eq.s32.totalorder %s124_s20, 0  ;;  %p137_p1 = scmp.ne.s32.totalorder %s699_s16, %s695_s15 }
   0x5   : > { %p138_p2 = scmp.eq.s32.totalorder %s747_s18, 1  ;;  %p616_p3 = scmp.ge.s32.totalorder %s703_s17, 1 }
   0x6   : > { %s757_s22 = scalar_select %p125_p0, %s699_s16, %s127_s21  }
   0x7   : > { %p761_p4 = por %p138_p2, %p137_p1  ;;  %p187_p5 = scmp.lt.s32.totalorder %s703_s17, 3 }
   0x9   : > { %p188_p6 = pnand %p616_p3, %p187_p5 }
   0xa   : > { %p225_p7 = scmp.lt.s32.totalorder (!%p188_p6), %s747_s18, 1  ;;  %s230_s24 = sadd.s32 (!%p188_p6), 1, %s747_s18 }
   0xb   : > { %191 = sbr.rel (%p188_p6) target bundleno = 186 (0xba), region = 32  ;;  %p770_p8 = scmp.lt.s32.totalorder (!%p188_p6), %s230_s24, 1 }
   0xc   : > { %s705_s6 = smov (!%p188_p6), 112   ;;  %s706_s7 = smov (!%p188_p6), 127  }
   0xd   : > { %s707_s12 = smov (!%p188_p6), 111   ;;  %s222_s17 = sand.u32 (!%p188_p6), 1, %s695_s15  }
   0xe   : > { %s640_s20 = smul.u32 (!%p188_p6), 48, %s222_s17 }
  0x10   : > { %s768_s25 = scalar_select %p225_p7, %s747_s18, 1  ;;  %v250_v2 = vlaneseq  ;;  %v627_v17 = vld [vmem:[%s1013_s2 + $0x1] ss:$2 sm:$0x3]  ;;  %v708_v19 = vmov 0   ;;  %vm1018_vm3 = vcmask 1039360  }
  0x11   : > { %s1044_s24 = smov (!%p770_p8, %s230_s24), 1  ;;  %vm401_vm2 = vcmp.ne.s32.totalorder %v627_v17, 0  ;;  %v397_v39 = vld [vmem:[%s1013_s2] ss:$2 sm:$0x3] }
  0x12   : > { %s636_s27 = sshll.u32 %s768_s25, 4  ;;  %s1046_s24 = smov (!%p770_p8, %s1044_s24), 1  ;;  %v251_v6 = vshrl.u32 %v250_v2, 7  ;;  %v435_v20 = vsel %vm401_vm2, 1, %v708_v19  ;;  %vm398_vm2 = vcmp.ne.s32.totalorder %v397_v39, 0 }
  0x13   : > { %s229_s30 = scalar_lea.vmem %s1011_s0, %s636_s27  ;;  %s637_s8 = sshll.u32 %s1046_s24, 4  ;;  %v436_v21 = vperm.slane %v435_v20, 0  ;;  %v437_v22 = vperm.slane %v435_v20, 1  ;;  %v416_v48 = vsel %vm398_vm2, 1, %v708_v19 }
  0x14   : > { %v246_v0 = vld [vmem:[%s229_s30] sm:$0xff]  ;;  %s256_s5 = scalar_select %p138_p2, 1, 0  ;;  %v247_v5 = vld [vmem:[%s229_s30 + $0x8] sm:$0xff]  ;;  %vm261_vm1 = vcmp.eq.s32.totalorder %v251_v6, 7  ;;  %v417_v52 = vperm.slane %v416_v48, 0 }
  0x15   : > { %v782_v1 = vsub.f32 0.0, %v246_v0  ;;  %v626_v4 = vld [vmem:[%s229_s30 + $0x7] ss:$8 sm:$0x3]  ;;  %s237_s11 = scalar_lea.vmem %s1012_s1, %s637_s8  ;;  %v793_v9 = vsub.f32 0.0, %v247_v5  ;;  %vm438_vm6 = vcmp.eq.s32.totalorder %v436_v21, 1  ;;  %s245_s29 = scalar_lea.vmem %s1014_s3, %s636_s27 }
  0x16   : > { %v257_v3 = vstv %s256_s5  ;;  %v255_v7 = vld [vmem:[%s237_s11] ss:$8 sm:$0x3]  ;;  %vm439_vm9 = vcmp.eq.s32.totalorder %v437_v22, 1  ;;  %s885_s24 = scalar_lea.vmem [#allocation2], %s640_s20  ;;  %v418_v54 = vperm.slane %v416_v48, 1 }
  0x17   : > { %278 = vrot.lane.b32.xlu1 %v782_v1, %s705_s6  ;;  %288 = vrot.lane.b32.xlu2 %v782_v1, %s706_s7  ;;  %vm258_vm0 = vcmp.eq.s32.totalorder %v257_v3, 1  ;;  %v264_v11 = vrot.slane %v782_v1, 1  ;;  %v265_v14 = vrot.slane %v793_v9, 1  ;;  %vm337_vm4 = vcmp.lt.f32.partialorder %v782_v1, 0.0  ;;  %s639_s30 = sshll.u32 (%p761_p4), %s747_s18, 4 }
  0x18   : > { %v259_v8 = vsel %vm258_vm0, %v626_v4, %v255_v7  ;;  %vm338_vm5 = vcmp.lt.f32.partialorder %v793_v9, 0.0  ;;  %vm420_vm2 = vcmp.eq.s32.totalorder %v418_v54, 1  ;;  %s497_s27 = scalar_lea.vmem (%p761_p4), %s1015_s4, %s639_s30 }
  0x19   : > { %v260_v10 = vsub.f32 0.0, %v259_v8  ;;  %v340_v8 = vsel %vm338_vm5, 1, %v708_v19 }
  0x1b   : > { %v272_v12 = vperm.slane %v260_v10, 0  ;;  %v273_v15 = vperm.slane %v260_v10, 1 }
  0x1d   : > { %v798_v13 = vsel %vm261_vm1, %v272_v12, %v264_v11  ;;  %v802_v16 = vsel %vm261_vm1, %v273_v15, %v265_v14  ;;  %v339_v14 = vsel %vm337_vm4, 1, %v708_v19 }
  0x1e   : > { %310 = vrot.lane.b32.xlu0 %v798_v13, %s705_s6  ;;  %v405_v31 = vsub.f32 %v793_v9, %v802_v16  ;;  %v404_v33 = vsub.f32 %v782_v1, %v798_v13  ;;  %vm342_vm14 = vcmp.lt.f32.partialorder %v802_v16, 0.0  ;;  %vm341_vm0 = vcmp.lt.f32.partialorder %v798_v13, 0.0 }
  0x1f   : > { %280 = vrot.lane.b32.xlu1 %v793_v9, %s705_s6  ;;  %290 = vrot.lane.b32.xlu2 %v793_v9, %s706_s7  ;;  %vm859_vm15 = vmxor %vm338_vm5, %vm342_vm14  ;;  %v344_v2 = vsel %vm342_vm14, 1, %v708_v19  ;;  %v343_v4 = vsel %vm341_vm0, 1, %v708_v19 }
  0x20   : > { %v407_v35 = vsel %vm859_vm15, %v405_v31, 1.0  ;;  %vm870_vm1 = vmxor %vm337_vm4, %vm341_vm0  ;;  %v346_v6 = vmul.u32 2, %v344_v2  ;;  %v345_v12 = vmul.u32 2, %v343_v4 }
  0x21   : > { %v406_v37 = vsel %vm870_vm1, %v404_v33, 1.0 }
  0x22   : > { %v348_v20 = vadd.s32 %v346_v6, %v340_v8  ;;  %v347_v22 = vadd.s32 %v345_v12, %v339_v14 }
  0x26   : > { %312 = vrot.lane.b32.xlu0 %v802_v16, %s705_s6 }
  0x27   : > { %321 = vrot.lane.b32.xlu1 %v802_v16, %s706_s7  ;;  %328 = vrot.lane.b32.xlu2 %v798_v13, %s707_s12 }
  0x2e   : > { %319 = vrot.lane.b32.xlu0 %v798_v13, %s706_s7 }
  0x2f   : > { %298 = vrot.lane.b32.xlu1 %v782_v1, %s707_s12  ;;  %300 = vrot.lane.b32.xlu2 %v793_v9, %s707_s12 }
  0x36   : > { %330 = vrot.lane.b32.xlu0 %v802_v16, %s707_s12 }
  0x71   : > { %v289_v18 = vpop.permute.xlu2 %288 }
  0x79   : > { %v291_v23 = vpop.permute.xlu2 %290 }
  0x7a   : > { %v818_v24 = vsel %vm1018_vm3, %v289_v18, %v291_v23  ;;  %v821_v25 = vsel %vm1018_vm3, %v291_v23, %v289_v18 }
  0x7b   : > { %vm1017_vm7 = vcmp.lt.f32.partialorder %v818_v24, 0.0  ;;  %vm1016_vm8 = vcmp.lt.f32.partialorder %v821_v25, 0.0  ;;  %v442_v26 = vsub.f32 %v782_v1, %v818_v24  ;;  %v443_v27 = vsub.f32 %v793_v9, %v821_v25 }
  0x7c   : > { %vm433_vm10 = vmxor %vm337_vm4, %vm1017_vm7 }
  0x7d   : > { %vm434_vm11 = vmxor %vm338_vm5, %vm1016_vm8 }
  0x7e   : > { %vm837_vm12 = vmand %vm433_vm10, %vm438_vm6  ;;  %vm1019_vm6 = vcmask 916480  }
  0x7f   : > { %vm841_vm13 = vmand %vm434_vm11, %vm439_vm9  ;;  %v444_v30 = vsel %vm837_vm12, %v442_v26, 1.0  ;;  %vm419_vm9 = vcmp.eq.s32.totalorder %v417_v52, 1 }
  0x80   : > { %v445_v32 = vsel %vm841_vm13, %v443_v27, 1.0  ;;  %669 = vrcp.f32 %v444_v30 }
  0x81   : > { %671 = vrcp.f32 %v445_v32  ;;  %v329_v3 = vpop.permute.xlu2 %328 }
  0x82   : > { %673 = vrcp.f32 %v407_v35 }
  0x83   : > { %675 = vrcp.f32 %v406_v37 }
  0x86   : > { %v670_v38 = vpop.eup %669 }
  0x87   : > { %v672_v40 = vpop.eup %671  ;;  %v448_v41 = vmul.f32 %v670_v38, %v782_v1 }
  0x88   : > { %v449_v42 = vmul.f32 %v672_v40, %v793_v9  ;;  %v674_v46 = vpop.eup %673 }
  0x89   : > { %v450_v43 = vsel %vm837_vm12, %v448_v41, 0.0  ;;  %v279_v44 = vpop.permute.xlu1 %278  ;;  %v676_v47 = vpop.eup %675  ;;  %v411_v49 = vmul.f32 %v674_v46, %v793_v9 }
  0x8a   : > { %v451_v45 = vsel %vm841_vm13, %v449_v42, 0.0  ;;  %630 = vst [vmem:[%s885_s24 + $0x20] sm:$0xff] %v450_v43  ;;  %v410_v50 = vmul.f32 %v676_v47, %v782_v1  ;;  %v301_v32 = vpop.permute.xlu2 %300 }
  0x8b   : > { %631 = vst [vmem:[%s885_s24 + $0x28] sm:$0xff] %v451_v45  ;;  %v413_v51 = vsel %vm859_vm15, %v411_v49, 0.0 }
  0x8c   : > { %v412_v53 = vsel %vm870_vm1, %v410_v50, 0.0  ;;  %473 = vst [vmem:[%s885_s24 + $0x8] sm:$0xff] %v413_v51 }
  0x8d   : > { %472 = vst [vmem:[%s885_s24] sm:$0xff] %v412_v53 }
  0x90   : > { %v311_v58 = vpop.permute.xlu0 %310 }
  0x91   : > { %v281_v55 = vpop.permute.xlu1 %280 }
  0x92   : > { %v283_v56 = vsel %vm1019_vm6, %v279_v44, %v281_v55  ;;  %v287_v57 = vsel %vm1019_vm6, %v281_v55, %v279_v44 }
  0x93   : > { %vm357_vm10 = vcmp.lt.f32.partialorder %v283_v56, 0.0  ;;  %vm358_vm11 = vcmp.lt.f32.partialorder %v287_v57, 0.0  ;;  %v423_v59 = vsub.f32 %v782_v1, %v283_v56  ;;  %v424_v60 = vsub.f32 %v793_v9, %v287_v57  ;;  %v512_v29 = vld [vmem:[%s885_s24 + $0x8] sm:$0xff] (%p761_p4) }
  0x94   : > { %vm414_vm8 = vmxor %vm337_vm4, %vm357_vm10  ;;  %v359_v33 = vsel %vm357_vm10, 1, %v708_v19  ;;  %vm302_vm4 = vcmask 908288   ;;  %vm1038_vm10 = vcmp.lt.f32.partialorder %v818_v24, 0.0  ;;  %v453_v57 = vsel %vm859_vm15, 1, %v708_v19  ;;  %513 = vst [vmem:[%s497_s27 + $0x8] sm:$0xff] (%p761_p4), %v512_v29 }
  0x95   : > { %vm415_vm7 = vmxor %vm338_vm5, %vm358_vm11  ;;  %vm1036_vm5 = vcmask 1039360   ;;  %v367_v42 = vsel %vm1038_vm10, 1, %v708_v19  ;;  %v361_v44 = vmul.u32 8, %v359_v33 }
  0x96   : > { %vm908_vm3 = vmand %vm414_vm8, %vm419_vm9  ;;  %v369_v50 = vmul.u32 16, %v367_v42 }
  0x97   : > { %vm912_vm6 = vmand %vm415_vm7, %vm420_vm2  ;;  %v425_v63 = vsel %vm908_vm3, %v423_v59, 1.0  ;;  %vm1034_vm7 = vcmask 916480  }
  0x98   : > { %v426_v0 = vsel %vm912_vm6, %v424_v60, 1.0  ;;  %677 = vrcp.f32 %v425_v63  ;;  %v313_v7 = vpop.permute.xlu0 %312  ;;  %vm1035_vm8 = vmmov %vm1034_vm7  ;;  %v459_v12 = vsel %vm912_vm6, 1, %v708_v19 }
  0x99   : > { %679 = vrcp.f32 %v426_v0  ;;  %v322_v5 = vpop.permute.xlu1 %321  ;;  %v314_v10 = vsel %vm1034_vm7, %v311_v58, %v313_v7  ;;  %v318_v11 = vsel %vm1035_vm8, %v313_v7, %v311_v58  ;;  %vm1037_vm0 = vmmov %vm1036_vm5  ;;  %v452_v58 = vsel %vm870_vm1, 1, %v708_v19 }
  0x9a   : > { %vm349_vm14 = vcmp.lt.f32.partialorder %v314_v10, 0.0  ;;  %vm350_vm9 = vcmp.lt.f32.partialorder %v318_v11, 0.0  ;;  %v455_v10 = vmul.u32 256, %v453_v57  ;;  %v454_v36 = vmul.u32 256, %v452_v58 }
  0x9b   : > { %v351_v15 = vsel %vm349_vm14, 1, %v708_v19  ;;  %v352_v16 = vsel %vm350_vm9, 1, %v708_v19  ;;  %v458_v11 = vsel %vm908_vm3, 1, %v708_v19 }
  0x9c   : > { %v353_v23 = vmul.u32 4, %v351_v15  ;;  %v354_v26 = vmul.u32 4, %v352_v16  ;;  %v464_v15 = vsel %vm837_vm12, 1, %v708_v19  ;;  %v465_v16 = vsel %vm841_vm13, 1, %v708_v19 }
  0x9d   : > { %v466_v61 = vmul.u32 1024, %v464_v15 }
  0x9e   : > { %v678_v13 = vpop.eup %677  ;;  %v355_v35 = vadd.s32 %v353_v23, %v347_v22  ;;  %v356_v37 = vadd.s32 %v354_v26, %v348_v20  ;;  %v467_v22 = vmul.u32 1024, %v465_v16 }
  0x9f   : > { %v680_v17 = vpop.eup %679  ;;  %v429_v18 = vmul.f32 %v678_v13, %v782_v1  ;;  %v360_v1 = vsel %vm358_vm11, 1, %v708_v19  ;;  %vm1039_vm11 = vcmp.lt.f32.partialorder %v821_v25, 0.0 }
  0xa0   : > { %v430_v21 = vmul.f32 %v680_v17, %v793_v9  ;;  %v320_v9 = vpop.permute.xlu0 %319  ;;  %v368_v43 = vsel %vm1039_vm11, 1, %v708_v19  ;;  %v362_v45 = vmul.u32 8, %v360_v1  ;;  %v363_v48 = vadd.s32 %v361_v44, %v355_v35 }
  0xa1   : > { %v431_v27 = vsel %vm908_vm3, %v429_v18, 0.0  ;;  %v299_v31 = vpop.permute.xlu1 %298  ;;  %v323_v38 = vsel %vm1036_vm5, %v320_v9, %v322_v5  ;;  %v327_v39 = vsel %vm1037_vm0, %v322_v5, %v320_v9  ;;  %v370_v51 = vmul.u32 16, %v368_v43 }
  0xa2   : > { %v432_v30 = vsel %vm912_vm6, %v430_v21, 0.0  ;;  %628 = vst [vmem:[%s885_s24 + $0x10] sm:$0xff] %v431_v27  ;;  %vm373_vm2 = vcmp.lt.f32.partialorder %v323_v38, 0.0  ;;  %vm374_vm7 = vcmp.lt.f32.partialorder %v327_v39, 0.0  ;;  %v303_v40 = vsel %vm302_vm4, %v299_v31, %v301_v32 }
  0xa3   : > { %629 = vst [vmem:[%s885_s24 + $0x18] sm:$0xff] %v432_v30  ;;  %v307_v41 = vsel %vm302_vm4, %v301_v32, %v299_v31  ;;  %v375_v46 = vsel %vm373_vm2, 1, %v708_v19  ;;  %v376_v47 = vsel %vm374_vm7, 1, %v708_v19  ;;  %vm389_vm8 = vcmp.lt.f32.partialorder %v303_v40, 0.0  ;;  %v518_v31 = vld [vmem:[%s885_s24 + $0x20] sm:$0xff] (%p761_p4)  ;;  %v520_v32 = vld [vmem:[%s885_s24 + $0x28] sm:$0xff] (%p761_p4) }
  0xa4   : > { %vm390_vm14 = vcmp.lt.f32.partialorder %v307_v41, 0.0  ;;  %v364_v49 = vadd.s32 %v362_v45, %v356_v37  ;;  %v377_v52 = vmul.u32 32, %v375_v46  ;;  %v378_v53 = vmul.u32 32, %v376_v47  ;;  %519 = vst [vmem:[%s497_s27 + $0x40] sm:$0xff] (%p761_p4), %v518_v31 }
  0xa5   : > { %v391_v54 = vsel %vm389_vm8, 1, %v708_v19  ;;  %v392_v25 = vsel %vm390_vm14, 1, %v708_v19  ;;  %v371_v60 = vadd.s32 %v369_v50, %v363_v48  ;;  %v460_v17 = vmul.u32 512, %v458_v11  ;;  %521 = vst [vmem:[%s497_s27 + $0x48] sm:$0xff] (%p761_p4), %v520_v32 }
  0xa6   : > { %v372_v59 = vadd.s32 %v370_v51, %v364_v49  ;;  %v393_v2 = vmul.u32 128, %v391_v54  ;;  %v394_v4 = vmul.u32 128, %v392_v25  ;;  %v461_v18 = vmul.u32 512, %v459_v12 }
  0xa7   : > { %v379_v5 = vadd.s32 %v377_v52, %v371_v60 }
  0xa8   : > { %v331_v24 = vpop.permute.xlu0 %330 }
  0xa9   : > { %v332_v55 = vsel %vm302_vm4, %v329_v3, %v331_v24  ;;  %v336_v56 = vsel %vm302_vm4, %v331_v24, %v329_v3  ;;  %v380_v3 = vadd.s32 %v378_v53, %v372_v59  ;;  %v514_v27 = vld [vmem:[%s885_s24 + $0x10] sm:$0xff] (%p761_p4) }
  0xaa   : > { %vm381_vm9 = vcmp.lt.f32.partialorder %v332_v55, 0.0  ;;  %vm382_vm5 = vcmp.lt.f32.partialorder %v336_v56, 0.0  ;;  %v516_v30 = vld [vmem:[%s885_s24 + $0x18] sm:$0xff] (%p761_p4)  ;;  %515 = vst [vmem:[%s497_s27 + $0x20] sm:$0xff] (%p761_p4), %v514_v27 }
  0xab   : > { %v383_v63 = vsel %vm381_vm9, 1, %v708_v19  ;;  %v384_v0 = vsel %vm382_vm5, 1, %v708_v19  ;;  %v510_v19 = vld [vmem:[%s885_s24] sm:$0xff] (%p761_p4)  ;;  %517 = vst [vmem:[%s497_s27 + $0x28] sm:$0xff] (%p761_p4), %v516_v30 }
  0xac   : > { %v385_v6 = vmul.u32 64, %v383_v63  ;;  %v386_v7 = vmul.u32 64, %v384_v0  ;;  %511 = vst [vmem:[%s497_s27] sm:$0xff] (%p761_p4), %v510_v19 }
  0xae   : > { %v387_v34 = vadd.s32 %v385_v6, %v379_v5  ;;  %v388_v8 = vadd.s32 %v386_v7, %v380_v3 }
  0xb0   : > { %v395_v14 = vadd.s32 %v393_v2, %v387_v34  ;;  %v396_v13 = vadd.s32 %v394_v4, %v388_v8 }
  0xb2   : > { %v456_v20 = vadd.s32 %v454_v36, %v395_v14  ;;  %v457_v21 = vadd.s32 %v455_v10, %v396_v13 }
  0xb4   : > { %v462_v23 = vadd.s32 %v460_v17, %v456_v20  ;;  %v463_v26 = vadd.s32 %v461_v18, %v457_v21 }
  0xb5   : > { %494 = sbr.rel (!%p761_p4) target bundleno = 186 (0xba), region = 40 }
  0xb6   : > { %v468_v62 = vadd.s32 %v466_v61, %v462_v23  ;;  %v469_v28 = vadd.s32 %v467_v22, %v463_v26 }
  0xb8   : > { %470 = vst [vmem:[%s245_s29] sm:$0xff] %v468_v62 }
  0xb9   : > { %471 = vst [vmem:[%s245_s29 + $0x8] sm:$0xff] %v469_v28 }
  0xba PF: > { %p12_p9 = scmp.ge.s32.totalorder %s749_s19, 4   ;;  %s1040_s15 = smov %s699_s16 }
  0xbb   : > { %s1041_s16 = smov %s757_s22  ;;  %s1042_s17 = smov %s749_s19 }
  0xbc   :  { %14 = sbr.rel (!%p12_p9) target bundleno = 2 (0x2), region = 104 }

</bundles_post_ra>
